<compile_context>
chip_gen: v7x
topology: tpu7x:2x2x1
jax: 0.10.0
libtpu: 0.0.40
codegen_flags: <defaults>
</compile_context>

<pallas_src>
import functools

import jax
import jax.numpy as jnp
from jax.experimental import pallas as pl
from jax.experimental.pallas import tpu as pltpu


def _round_up(x, m):
    return (x + m - 1) // m * m


def _dila_conv_kernel(xc_ref, xn_ref, w_ref, b_ref, o_ref, *, dilation, kernel_size):
    # xc_ref / xn_ref : (1, 1, c_in_g, tT)   current / next time tile of x (halo)
    # w_ref           : (1, c_out_g, K*c_in_g)
    # b_ref           : (1, c_out_g, 1)
    # o_ref           : (1, 1, c_out_g, tT)
    tT = o_ref.shape[-1]

    # Window covering this output tile plus its right halo (halo <= tT, wrapper asserts).
    xw = jnp.concatenate([xc_ref[0, 0], xn_ref[0, 0]], axis=-1)      # (c_in_g, 2*tT)

    # im2col built once per tile: stack the K dilated taps along the contraction axis.
    taps = [xw[:, k * dilation:k * dilation + tT] for k in range(kernel_size)]
    xcat = jnp.concatenate(taps, axis=0)                             # (K*c_in_g, tT)

    # Single matmul per tile, f32 accumulate; time (tT) on the lane axis.
    acc = jnp.dot(w_ref[0], xcat, preferred_element_type=jnp.float32)  # (c_out_g, tT)
    o_ref[0, 0] = (acc + b_ref[0]).astype(o_ref.dtype)               # bias (c_out_g, 1) broadcasts


def dila_conv2_pallas(x, weight, bias, *, kernel_size, dilation, group):
    """x: (B, c_in, T) f32.  weight: (c_out, c_in//group, K).  bias: (c_out,)."""
    B, c_in, T = x.shape
    c_out = weight.shape[0]
    K = kernel_size
    halo = dilation * (K - 1)
    T_out = T - halo
    assert T_out > 0, "dilation*(kernel_size-1) must be smaller than T"
    assert c_in % group == 0 and c_out % group == 0
    c_in_g = c_in // group
    c_out_g = c_out // group
    assert weight.shape == (c_out, c_in_g, K)

    # Time tile: multiple of 128 (lane-dense), capped, and at least as large as the halo.
    tT = min(1024, _round_up(T_out, 128))
    tT = max(tT, _round_up(halo, 128))
    nT = pl.cdiv(T_out, tT)
    T_out_p = nT * tT
    T_x_p = (nT + 1) * tT          # extra tile so the "next tile" block always exists
    assert halo <= tT

    # Split channels by group (pure reshape, no data movement) and zero-pad time.
    x_g = x.astype(jnp.float32).reshape(B, group, c_in_g, T)
    x_p = jnp.pad(x_g, ((0, 0), (0, 0), (0, 0), (0, T_x_p - T)))

    # weight (c_out, c_in_g, K) -> (group, c_out_g, K*c_in_g); row order (k outer, ci inner)
    # matches the im2col stacking order in the kernel.
    w_r = weight.astype(jnp.float32).reshape(group, c_out_g, c_in_g, K)
    w2 = jnp.transpose(w_r, (0, 1, 3, 2)).reshape(group, c_out_g, K * c_in_g)
    b2 = bias.astype(jnp.float32).reshape(group, c_out_g, 1)

    kernel = functools.partial(_dila_conv_kernel, dilation=dilation, kernel_size=K)

    flops = 2 * B * T_out * K * c_in_g * c_out
    bytes_accessed = 4 * (x.size + weight.size + bias.size + B * c_out * T_out)

    out_p = pl.pallas_call(
        kernel,
        out_shape=jax.ShapeDtypeStruct((B, group, c_out_g, T_out_p), jnp.float32),
        grid_spec=pltpu.PrefetchScalarGridSpec(
            num_scalar_prefetch=0,
            grid=(B, group, nT),
            in_specs=[
                # current time tile of x
                pl.BlockSpec((1, 1, c_in_g, tT), lambda b, g, t: (b, g, 0, t)),
                # next time tile of x (right halo for the dilated taps)
                pl.BlockSpec((1, 1, c_in_g, tT), lambda b, g, t: (b, g, 0, t + 1)),
                # per-group weight / bias (constant over b, t)
                pl.BlockSpec((1, c_out_g, K * c_in_g), lambda b, g, t: (g, 0, 0)),
                pl.BlockSpec((1, c_out_g, 1), lambda b, g, t: (g, 0, 0)),
            ],
            out_specs=pl.BlockSpec((1, 1, c_out_g, tT), lambda b, g, t: (b, g, 0, t)),
        ),
        compiler_params=pltpu.CompilerParams(
            dimension_semantics=("parallel", "parallel", "parallel"),
            vmem_limit_bytes=32 * 1024 * 1024,
        ),
        cost_estimate=pl.CostEstimate(
            flops=flops, transcendentals=0, bytes_accessed=bytes_accessed),
    )(x_p, x_p, w2, b2)

    # (B, group, c_out_g, T_out_p) -> (B, c_out, T_out); channel order matches Conv1d groups.
    return out_p.reshape(B, c_out, T_out_p)[:, :, :T_out]


def _reference_conv1d(x, weight, bias, *, kernel_size, dilation, group):
    """Pure-JAX reference matching torch.nn.Conv1d semantics."""
    out = jax.lax.conv_general_dilated(
        x, weight,
        window_strides=(1,),
        padding="VALID",
        rhs_dilation=(dilation,),
        dimension_numbers=("NCH", "OIH", "NCH"),
        feature_group_count=group,
    )
    return out + bias.reshape(1, -1, 1)


if __name__ == "__main__":
    # Small shapes consistent with the module's forward.
    B, c_in, T = 2, 4, 16
    c_out, kernel_size, dilation, group = 8, 3, 2, 2

    key = jax.random.PRNGKey(0)
    kx, kw, kb = jax.random.split(key, 3)
    x = jax.random.normal(kx, (B, c_in, T), dtype=jnp.float32)
    weight = jax.random.normal(
        kw, (c_out, c_in // group, kernel_size), dtype=jnp.float32) * 0.1
    bias = jax.random.normal(kb, (c_out,), dtype=jnp.float32) * 0.1

    out = dila_conv2_pallas(x, weight, bias,
                            kernel_size=kernel_size,
                            dilation=dilation,
                            group=group)
    out = jax.block_until_ready(out)

    ref = _reference_conv1d(x, weight, bias,
                            kernel_size=kernel_size,
                            dilation=dilation,
                            group=group)
    assert out.shape == (B, c_out, T - dilation * (kernel_size - 1))
    assert jnp.allclose(out, ref, atol=1e-4, rtol=1e-4)
    print("KERNEL_OK")
</pallas_src>

<mosaic_0001>
module attributes {stable_mosaic.version = 11 : i64} {
  func.func @_dila_conv_kernel(%arg0: i32, %arg1: i32, %arg2: i32, %arg3: memref<1x1x2x128xf32, #tpu.memory_space<vmem>>, %arg4: memref<1x1x2x128xf32, #tpu.memory_space<vmem>>, %arg5: memref<1x4x6xf32, #tpu.memory_space<vmem>>, %arg6: memref<1x4x1xf32, #tpu.memory_space<vmem>>, %arg7: memref<1x1x4x128xf32, #tpu.memory_space<vmem>>) attributes {dimension_semantics = [#tpu.dimension_semantics<parallel>, #tpu.dimension_semantics<parallel>, #tpu.dimension_semantics<parallel>], iteration_bounds = array<i64: 2, 2, 1>, scalar_prefetch = 0 : i64, scratch_operands = 0 : i64, tpu.core_type = #tpu.core_type<tc>, window_params = [{transform_indices = @transform_0, window_bounds = array<i64: 1, 1, 2, 128>}, {transform_indices = @transform_1, window_bounds = array<i64: 1, 1, 2, 128>}, {transform_indices = @transform_2, window_bounds = array<i64: 1, 4, 6>}, {transform_indices = @transform_3, window_bounds = array<i64: 1, 4, 1>}, {transform_indices = @transform_4, window_bounds = array<i64: 1, 1, 4, 128>}]} {
    %c0 = arith.constant 0 : index
    %c0_0 = arith.constant 0 : index
    %c0_1 = arith.constant 0 : index
    %c0_2 = arith.constant 0 : index
    %0 = vector.load %arg3[%c0, %c0_0, %c0_1, %c0_2] : memref<1x1x2x128xf32, #tpu.memory_space<vmem>>, vector<1x1x2x128xf32>
    %1 = vector.shape_cast %0 : vector<1x1x2x128xf32> to vector<2x128xf32>
    %c0_3 = arith.constant 0 : index
    %c0_4 = arith.constant 0 : index
    %c0_5 = arith.constant 0 : index
    %c0_6 = arith.constant 0 : index
    %2 = vector.load %arg4[%c0_3, %c0_4, %c0_5, %c0_6] : memref<1x1x2x128xf32, #tpu.memory_space<vmem>>, vector<1x1x2x128xf32>
    %3 = vector.shape_cast %2 : vector<1x1x2x128xf32> to vector<2x128xf32>
    %4 = tpu.concatenate %1, %3 in 1 : vector<2x128xf32>, vector<2x128xf32> -> vector<2x256xf32>
    %5 = vector.extract_strided_slice %4 {offsets = [0, 0], sizes = [2, 128], strides = [1, 1]} : vector<2x256xf32> to vector<2x128xf32>
    %6 = vector.extract_strided_slice %4 {offsets = [0, 2], sizes = [2, 128], strides = [1, 1]} : vector<2x256xf32> to vector<2x128xf32>
    %7 = vector.extract_strided_slice %4 {offsets = [0, 4], sizes = [2, 128], strides = [1, 1]} : vector<2x256xf32> to vector<2x128xf32>
    %8 = tpu.concatenate %5, %6, %7 in 0 : vector<2x128xf32>, vector<2x128xf32>, vector<2x128xf32> -> vector<6x128xf32>
    %c0_7 = arith.constant 0 : index
    %c0_8 = arith.constant 0 : index
    %c0_9 = arith.constant 0 : index
    %9 = vector.load %arg5[%c0_7, %c0_8, %c0_9] : memref<1x4x6xf32, #tpu.memory_space<vmem>>, vector<1x4x6xf32>
    %10 = vector.shape_cast %9 : vector<1x4x6xf32> to vector<4x6xf32>
    %cst = arith.constant dense<0.000000e+00> : vector<4x128xf32>
    %11 = tpu.matmul %10, %8, %cst {dimension_numbers = #tpu.dot_dimension_numbers<[1], [0], [0], [1], [0, 0, 1, 1], [], []>} : vector<4x6xf32>, vector<6x128xf32>, vector<4x128xf32> -> vector<4x128xf32>
    %c0_10 = arith.constant 0 : index
    %c0_11 = arith.constant 0 : index
    %c0_12 = arith.constant 0 : index
    %12 = vector.load %arg6[%c0_10, %c0_11, %c0_12] : memref<1x4x1xf32, #tpu.memory_space<vmem>>, vector<1x4x1xf32>
    %13 = vector.shape_cast %12 : vector<1x4x1xf32> to vector<4x1xf32>
    %14 = vector.broadcast %13 : vector<4x1xf32> to vector<4x128xf32>
    %15 = arith.addf %11, %14 : vector<4x128xf32>
    %c0_13 = arith.constant 0 : index
    %c0_14 = arith.constant 0 : index
    %c0_15 = arith.constant 0 : index
    %c0_16 = arith.constant 0 : index
    %16 = vector.load %arg7[%c0_13, %c0_14, %c0_15, %c0_16] : memref<1x1x4x128xf32, #tpu.memory_space<vmem>>, vector<1x1x4x128xf32>
    %17 = vector.shape_cast %16 : vector<1x1x4x128xf32> to vector<4x128xf32>
    %18 = vector.shape_cast %15 : vector<4x128xf32> to vector<1x1x4x128xf32>
    tpu.vector_store %arg7[%c0_13, %c0_14, %c0_15, %c0_16], %18 {strides = array<i32>} : memref<1x1x4x128xf32, #tpu.memory_space<vmem>>, vector<1x1x4x128xf32>,
    return
  }
  func.func @transform_0(%arg0: i32, %arg1: i32, %arg2: i32) -> (i32, i32, i32, i32) {
    %c0_i32 = arith.constant 0 : i32
    %c0_i32_0 = arith.constant 0 : i32
    return %arg0, %arg1, %c0_i32, %arg2 : i32, i32, i32, i32
  }
  func.func @transform_1(%arg0: i32, %arg1: i32, %arg2: i32) -> (i32, i32, i32, i32) {
    %c1_i32 = arith.constant 1 : i32
    %0 = arith.addi %arg2, %c1_i32 : i32
    %c0_i32 = arith.constant 0 : i32
    %c0_i32_0 = arith.constant 0 : i32
    return %arg0, %arg1, %c0_i32, %0 : i32, i32, i32, i32
  }
  func.func @transform_2(%arg0: i32, %arg1: i32, %arg2: i32) -> (i32, i32, i32) {
    %c0_i32 = arith.constant 0 : i32
    %c0_i32_0 = arith.constant 0 : i32
    %c0_i32_1 = arith.constant 0 : i32
    return %arg1, %c0_i32, %c0_i32_0 : i32, i32, i32
  }
  func.func @transform_3(%arg0: i32, %arg1: i32, %arg2: i32) -> (i32, i32, i32) {
    %c0_i32 = arith.constant 0 : i32
    %c0_i32_0 = arith.constant 0 : i32
    %c0_i32_1 = arith.constant 0 : i32
    return %arg1, %c0_i32, %c0_i32_0 : i32, i32, i32
  }
  func.func @transform_4(%arg0: i32, %arg1: i32, %arg2: i32) -> (i32, i32, i32, i32) {
    %c0_i32 = arith.constant 0 : i32
    %c0_i32_0 = arith.constant 0 : i32
    return %arg0, %arg1, %c0_i32, %arg2 : i32, i32, i32, i32
  }
}

</mosaic_0001>

<bundles_post_ra>
// kernel: tpu_custom_call.1
= control target key start
LH: loop header
LB: loop body
LE: loop exit
PB: predicated region body
PF: predicated region fallthrough
CT: control target
= control target key end

     0   :  { %s1171_s0 = inlined_call_operand.hbm [shape: f32[2,2,2,256], index: 0, kind: input, shape index: {}]   ;;  %s1172_s1 = inlined_call_operand.hbm [shape: f32[2,2,2,256], index: 1, kind: input, shape index: {}]   ;;  %s1173_s2 = inlined_call_operand.vmem [shape: f32[2,4,6], index: 2, kind: input, shape index: {}]   ;;  %s1174_s3 = inlined_call_operand.vmem [shape: f32[2,4,1], index: 3, kind: input, shape index: {}]   ;;  %s1175_s4 = inlined_call_operand.hbm [shape: f32[2,2,4,128], index: 4, kind: output, shape index: {}]  }
   0x1   :  { %1182 = sst [smem:[#allocation13_spill]] %s1171_s0 }
   0x2   :  { %9 = vsyncpa [#allocation3], 0 }
   0x3   :  { %11 = vsyncpa [#allocation3 + $0x1], 0 }
   0x4   :  { %12 = vsyncpa [#allocation6], 0 }
   0x5   :  { %14 = vsyncpa [#allocation6 + $0x1], 0 }
   0x6   :  { %15 = vsyncpa [#allocation4], 0 }
   0x7   :  { %17 = vsyncpa [#allocation4 + $0x1], 0  ;;  %s918_s15 = smov 0   ;;  %s920_s16 = smov 0  }
   0x8   :  { %s922_s17 = smov 0   ;;  %s924_s18 = smov 0  }
   0x9   :  { %s926_s19 = smov 0   ;;  %s928_s20 = smov 0  }
   0xa   :  { %s930_s21 = smov 0   ;;  %s932_s22 = smov 0  }
   0xb LB: > { %s599_s23 = sadd.s32 4294967295, %s883_s22   ;;  %s600_s24 = sadd.s32 4294967294, %s883_s22   ;;  %s883_s22 = sphi %s932_s22, %s23_s22   ;;  %s879_s21 = sphi %s930_s21, %s1208_s21   ;;  %s875_s20 = sphi %s928_s20, %s1207_s20   ;;  %s871_s19 = sphi %s926_s19, %s1206_s19   ;;  %s867_s18 = sphi %s924_s18, %s1205_s18   ;;  %s863_s17 = sphi %s922_s17, %s1204_s17   ;;  %s859_s16 = sphi %s920_s16, %s1203_s16   ;;  %s855_s15 = sphi %s918_s15, %s1202_s15  }
   0xc   : > { %s38_s25 = sadd.s32 1, %s875_s20  ;;  %s42_s26 = sadd.s32 1, %s879_s21 }
   0xd   : > { %p40_p0 = scmp.ge.s32.totalorder %s38_s25, 2  ;;  %s53_s27 = sadd.s32 1, %s863_s17 }
   0xe   : > { %p60_p1 = scmp.ne.s32.totalorder %s863_s17, %s859_s16  ;;  %p61_p2 = scmp.eq.s32.totalorder %s883_s22, 0 }
   0xf   : > { %s1210_s25 = smov (%p40_p0, %s38_s25), 0  ;;  %s1212_s26 = smov (!%p40_p0, %s42_s26), %s879_s21 }
  0x10   : > { %1183 = sst [smem:[#allocation11_spill]] %s1210_s25  ;;  %s47_s28 = ssub.s32 %s875_s20, %s1210_s25 }
  0x11   : > { %p971_p3 = por %p61_p2, %p60_p1  ;;  %p44_p4 = scmp.ge.s32.totalorder %s1212_s26, 2 }
  0x12   : > { %p66_p5 = scmp.ne.s32.totalorder %s859_s16, %s855_s15  ;;  %p67_p6 = scmp.eq.s32.totalorder %s599_s23, 0 }
  0x13   : > { %p178_p7 = scmp.eq.s32.totalorder %s599_s23, 3  ;;  %s1214_s26 = smov (%p44_p4, %s1212_s26), 0 }
  0x14   : > { %1185 = sst [smem:[#allocation12_spill]] %s1214_s26  ;;  %p979_p8 = por %p67_p6, %p66_p5 }
  0x15   : > { %p983_p9 = por %p178_p7, %p60_p1  ;;  %s46_s6 = ssub.s32 %s879_s21, %s1214_s26 }
  0x16   : > { %s1186_s30 = scalar_select %p979_p8, 1, 0 }
  0x17   : > { %s1187_s5 = scalar_select %p983_p9, 1, 0 }
  0x18   : > { %p184_p10 = scmp.eq.s32.totalorder %s600_s24, 3  ;;  %s48_s7 = sor.u32 %s47_s28, %s46_s6 }
  0x19   : > { %p51_p11 = scmp.eq.s32.totalorder %s48_s7, 0  ;;  %p648_p13 = scmp.lt.s32.totalorder %s883_s22, 4 }
  0x1a   : > { %p989_p12 = por %p184_p10, %p66_p5  ;;  %s995_s9 = sand.u32 1, %s863_s17  }
  0x1b   : > { %s998_s10 = scalar_select %p51_p11, %s863_s17, %s53_s27  }
  0x1c   : > { %s1188_s8 = scalar_select %p989_p12, 1, 0 }
  0x1d   : > { %s1176_s11 = sshll.u32 %s995_s9, 1  ;;  %s604_s12 = sshll.u32 %s875_s20, 1 }
  0x1e   : > { %s605_s13 = sshll.u32 %s879_s21, 2  ;;  %s208_s14 = scalar_lea.vmem [#allocation2], %s1176_s11 }
  0x1f   : > { %s219_s23 = sshll.u32 %s208_s14, 4  ;;  %s1005_s24 = sadd.s32 %s605_s13, %s604_s12  ;;  %s1007_s23 = int_to_ptr.vmem [resolvable:$true] %s219_s23 }
  0x20   : > { %s1177_s28 = sshll.u32 %s1005_s24, 5  ;;  %p1012_p0 = pnand %p648_p13, %p971_p3 }
  0x21   : > { %s1190_s0 = sld [smem:[#allocation13_spill]]  ;;  %s205_s12 = scalar_lea.sflag [#allocation3], %s995_s9 }
  0x22   : > { %p722_p4 = pneg %p1012_p0 }
  0x27   : > { %s1021_s11 = scalar_lea.hbm %s1190_s0, %s1177_s28  ;;  %s725_s27 = scalar_lea.hbm %s1190_s0, 256 }
  0x28   : > { %s720_s29 = scalar_lea.hbm %s1021_s11, 32  ;;  %p726_p7 = scmp.lt.u32.totalorder %s1021_s11, %s1190_s0 }
  0x29   : > { %p721_p3 = scmp.ne.s32.totalorder %s1021_s11, %s720_s29  ;;  %p727_p10 = scmp.lt.u32.totalorder %s725_s27, %s720_s29 }
  0x2a   : > { %p729_p13 = scmp.lt.u32.totalorder %s720_s29, %s1021_s11 }
  0x2b   : > { %p723_p5 = pnand %p722_p4, %p721_p3  ;;  %p728_p11 = por %p727_p10, %p726_p7 }
  0x2d   : > { %p724_p6 = pneg %p723_p5  ;;  %p730_p1 = por %p729_p13, %p728_p11 }
  0x2f   : > { %p731_p2 = pnand %p730_p1, %p724_p6 }
  0x31   : > { %734 = shalt.err (!%p731_p2)
}
  0x32   : > { %s735_s26 = scalar_lea.vmem %s1007_s23, 32  ;;  %s885_s13 = smov [#allocation2]  }
  0x33   : > { %p736_p3 = scmp.ne.s32.totalorder %s1007_s23, %s735_s26  ;;  %s740_s14 = sshll.u32 %s885_s13, 4  ;;  %s741_s14 = int_to_ptr.vmem [resolvable:$false] %s740_s14 }
  0x34   : > { %s742_s28 = scalar_lea.vmem %s741_s14, 64  ;;  %p743_p9 = scmp.lt.s32.totalorder %s1007_s23, %s741_s14 }
  0x35   : > { %p738_p5 = pnand %p736_p3, %p722_p4  ;;  %p744_p7 = scmp.lt.s32.totalorder %s742_s28, %s735_s26 }
  0x37   : > { %p739_p12 = pneg %p738_p5  ;;  %p745_p10 = por %p744_p7, %p743_p9 }
  0x39   : > { %p746_p11 = pnand %p745_p10, %p739_p12 }
  0x3b   : > { %749 = shalt.err (!%p746_p11)
}
  0x3c   : > { %640 = dma.hbm_to_vmem [thread:$0]  (!%p1012_p0), %s1021_s11, 32, %s1007_s23, %s205_s12  }
  0x3d   : > { %p1191_p1 = scmp.lt.s32.totalorder %s883_s22, 5  ;;  %p1192_p2 = scmp.ge.s32.totalorder %s883_s22, 1 }
  0x3e   : > { %s1194_s26 = sshll.u32 %s1005_s24, 5  ;;  %s1195_s28 = sshll.u32 %s995_s9, 1 }
  0x3f   : > { %p1055_p6 = pnand %p1192_p2, %p1191_p1  ;;  %s500_s13 = scalar_lea.hbm %s1172_s1, %s1194_s26 }
  0x40   : > { %s1064_s14 = scalar_lea.hbm %s500_s13, 32  ;;  %s230_s0 = scalar_lea.vmem [#allocation5], %s1195_s28 }
  0x41   : > { %s1193_s29 = scalar_select %p1055_p6, 1, 0 }
  0x42   : > { %s242_s25 = sshll.u32 %s230_s0, 4  ;;  %s227_s11 = scalar_lea.sflag [#allocation6], %s995_s9  ;;  %s243_s25 = int_to_ptr.vmem [resolvable:$true] %s242_s25 }
  0x43   : > { %s780_s23 = scalar_lea.hbm %s500_s13, 64  ;;  %s755_s26 = scalar_lea.hbm %s1172_s1, 256 }
  0x44   : > { %p751_p9 = scmp.ne.s32.totalorder %s1064_s14, %s780_s23  ;;  %p756_p3 = scmp.lt.u32.totalorder %s1064_s14, %s1172_s1 }
  0x45   : > { %p757_p5 = scmp.lt.u32.totalorder %s755_s26, %s780_s23  ;;  %p759_p10 = scmp.lt.u32.totalorder %s780_s23, %s1064_s14 }
  0x46   : > { %p753_p12 = pnand %p751_p9, %p722_p4 }
  0x47   : > { %p758_p7 = por %p757_p5, %p756_p3 }
  0x48   : > { %p754_p13 = pneg %p753_p12 }
  0x49   : > { %p760_p11 = por %p759_p10, %p758_p7 }
  0x4b   : > { %p761_p1 = pnand %p760_p11, %p754_p13 }
  0x4d   : > { %764 = shalt.err (!%p761_p1)
}
  0x4e   : > { %s765_s0 = scalar_lea.vmem %s243_s25, 32  ;;  %s886_s9 = smov [#allocation5]  }
  0x4f   : > { %p766_p2 = scmp.ne.s32.totalorder %s243_s25, %s765_s0  ;;  %s770_s13 = sshll.u32 %s886_s9, 4  ;;  %s771_s13 = int_to_ptr.vmem [resolvable:$false] %s770_s13 }
  0x50   : > { %s772_s28 = scalar_lea.vmem %s771_s13, 64  ;;  %p773_p8 = scmp.lt.s32.totalorder %s243_s25, %s771_s13 }
  0x51   : > { %p768_p9 = pnand %p766_p2, %p722_p4  ;;  %p774_p6 = scmp.lt.s32.totalorder %s772_s28, %s765_s0 }
  0x53   : > { %p769_p12 = pneg %p768_p9  ;;  %p775_p3 = por %p774_p6, %p773_p8 }
  0x55   : > { %p776_p5 = pnand %p775_p3, %p769_p12 }
  0x57   : > { %779 = shalt.err (!%p776_p5)
}
  0x58   : > { %643 = dma.hbm_to_vmem [thread:$0]  (!%p1012_p0), %s1064_s14, 32, %s243_s25, %s227_s11  }
  0x59   : > { %p1196_p13 = scmp.ne.s32.totalorder %s1193_s29, 0 }
  0x5a   : > { %s1090_s23 = sand.u32 (!%p1196_p13), 1, %s859_s16   ;;  %p1197_p4 = scmp.ne.s32.totalorder (!%p1196_p13), %s1186_s30, 0 }
  0x5b   : > { %265 = sbr.rel (%p1196_p13) target bundleno = 456 (0x1c8), region = 36  ;;  %s612_s24 = sshll.u32 (!%p1196_p13), %s1090_s23, 1 }
  0x5c   : > { %s268_s12 = scalar_lea.sflag (!%p1196_p13), [#allocation3], %s1090_s23  ;;  %s271_s26 = scalar_lea.vmem (!%p1196_p13), [#allocation2], %s612_s24 }
  0x62   : > { %842 = dma.done.wait (%p1197_p4), %s268_s12, 32  }
  0x63   : > { %844 = vsyncadd (%p1197_p4), %s268_s12, 4294967264  ;;  %s277_s25 = scalar_lea.sflag [#allocation6], %s1090_s23  ;;  %s280_s6 = scalar_lea.vmem [#allocation5], %s612_s24 }
  0x64   : > { %846 = dma.done.wait (%p1197_p4), %s277_s25, 32  }
  0x65   : > { %848 = vsyncadd (%p1197_p4), %s277_s25, 4294967264  ;;  %v887_v0 = vmov 0.0   ;;  %p319_p8 = scmp.lt.s32.totalorder %s867_s18, 1  ;;  %vm888_vm0 = vmmov 0   ;;  %v889_v1 = vmov 0   ;;  %s890_s14 = smov 124  }
  0x66   : > { %626 = vmatprep.subr.mxu0 %v887_v0  ;;  %628 = vmatprep.mubr.msk.f32.mxu0 %vm888_vm0, %v887_v0  ;;  %v327_v2 = vld [vmem:[%s271_s26] sm:$0x3]  ;;  %v328_v3 = vld [vmem:[%s280_s6] sm:$0x3]  ;;  %s891_s11 = smov 126   ;;  %vm346_vm1 = vcmask 1014784  }
  0x67   : > { %719 = vset.pattern.permute.xlu0 %v889_v1  ;;  %s320_s29 = scalar_select %p319_p8, %s867_s18, 1  ;;  %v340_v4 = vrot.slane %v327_v2, 4  ;;  %v331_v5 = vrot.slane %v327_v2, 6  ;;  %v341_v6 = vrot.slane %v328_v3, 4  ;;  %v332_v7 = vrot.slane %v328_v3, 6 }
  0x68   : > { %vm337_vm2 = vcmask 1031168   ;;  %vm349_vm3 = vcmask 1041408   ;;  %vm351_vm4 = vcmask 1043456   ;;  %vm364_vm5 = vcmask 1045504   ;;  %s614_s24 = sshll.u32 %s1090_s23, 2  ;;  %s620_s12 = sshll.u32 %s871_s19, 1 }
  0x69   : > { %342 = vrot.lane.b32.xlu1 %v340_v4, %s890_s14  ;;  %333 = vrot.lane.b32.xlu0 %v331_v5, %s891_s11  ;;  %s615_s30 = sshll.u32 %s320_s29, 2  ;;  %vm360_vm6 = vcmask 48128   ;;  %s452_s26 = sadd.s32 %s867_s18, %s620_s12 }
  0x6a   : > { %s326_s0 = scalar_lea.vmem %s1174_s3, %s615_s30  ;;  %s322_s28 = scalar_lea.vmem %s1173_s2, %s615_s30 }
  0x6b   : > { %v354_v8 = vld [vmem:[%s326_s0] sm:$0xf]  ;;  %s621_s25 = sshll.u32 %s452_s26, 6  ;;  %s317_s6 = scalar_lea.vmem [#allocation7], %s614_s24 }
  0x6c   : > { %v353_v16 = vld [vmem:[%s322_s28] sm:$0xf]  ;;  %s456_s29 = sshll.u32 %s317_s6, 4  ;;  %s1117_s30 = scalar_lea.hbm %s1175_s4, %s621_s25  ;;  %s1119_s29 = int_to_ptr.vmem [resolvable:$true] %s456_s29 }
  0x6d   : > { %344 = vrot.lane.b32.xlu1 %v341_v6, %s890_s14  ;;  %335 = vrot.lane.b32.xlu0 %v332_v7, %s891_s11  ;;  %s440_s19 = scalar_lea.sflag [#allocation4], %s1090_s23  ;;  %s781_s18 = scalar_lea.vmem %s1119_s29, 64 }
  0x6e   : > { %p782_p0 = scmp.ne.s32.totalorder %s1119_s29, %s781_s18  ;;  %p1198_p6 = scmp.ne.s32.totalorder %s1187_s5, 0 }
  0x6f   : > { %s892_s27 = smov [#allocation7]  }
  0x70   : > { %p783_p7 = pnand %p782_p0, %p1198_p6  ;;  %s785_s7 = sshll.u32 %s892_s27, 4  ;;  %s786_s7 = int_to_ptr.vmem [resolvable:$false] %s785_s7 }
  0x71   : > { %357 = vperm.xlu0 %719, %v354_v8   ;;  %s787_s0 = scalar_lea.vmem %s786_s7, 128  ;;  %p788_p11 = scmp.lt.s32.totalorder %s1119_s29, %s786_s7 }
  0x72   : > { %p784_p10 = pneg %p783_p7  ;;  %p789_p1 = scmp.lt.s32.totalorder %s787_s0, %s781_s18 }
  0x74   : > { %p790_p2 = por %p789_p1, %p788_p11 }
  0x76   : > { %p791_p9 = pnand %p790_p2, %p784_p10 }
  0xdb   : > { %v343_v9 = vpop.permute.xlu1 %342  ;;  %v334_v10 = vpop.permute.xlu0 %333 }
  0xdf   : > { %v345_v11 = vpop.permute.xlu1 %344  ;;  %v336_v12 = vpop.permute.xlu0 %335 }
  0xe0   : > { %v347_v13 = vsel %vm346_vm1, %v343_v9, %v345_v11  ;;  %v338_v14 = vsel %vm337_vm2, %v334_v10, %v336_v12 }
  0xe1   : > { %v350_v15 = vsel %vm349_vm3, %v327_v2, %v338_v14 }
  0xe2   : > { %v352_v17 = vsel %vm351_vm4, %v350_v15, %v347_v13 }
  0xe3   : > { %627 = vmatpush3.msk.msra.mxu0 %vm364_vm5, %v352_v17 }
  0xe4   : > { %629 = vmatmul.mubr.msk.f32.vlgmr.msra.gmra.mrb[0].mxu0 %vm360_vm6, %v353_v16 }
  0xf0   : > { %v358_v18 = vpop.permute.xlu0 %357 }
 0x1b7   : > { %v434_v19 = vpop.f32.mrb[0].mxu0 }
 0x1b8   : > { %v435_v20 = vadd.f32 %v434_v19, %v358_v18  ;;  %v630_v21 = vpop.f32.mrb[1].mxu0 }
 0x1ba   : > { %438 = vst [vmem:[%s317_s6] sm:$0xf] %v435_v20 }
 0x1bb   : > { %794 = shalt.err (!%p791_p9)
}
 0x1bc   : > { %s795_s23 = scalar_lea.hbm %s1117_s30, 64  ;;  %s799_s28 = scalar_lea.hbm %s1175_s4, 256 }
 0x1bd   : > { %p796_p12 = scmp.ne.s32.totalorder %s1117_s30, %s795_s23  ;;  %p800_p13 = scmp.lt.u32.totalorder %s1117_s30, %s1175_s4 }
 0x1be   : > { %p801_p4 = scmp.lt.u32.totalorder %s799_s28, %s795_s23  ;;  %p803_p0 = scmp.lt.u32.totalorder %s795_s23, %s1117_s30 }
 0x1bf   : > { %p797_p3 = pnand %p796_p12, %p1198_p6 }
 0x1c0   : > { %p802_p8 = por %p801_p4, %p800_p13 }
 0x1c1   : > { %p798_p5 = pneg %p797_p3 }
 0x1c2   : > { %p804_p7 = por %p803_p0, %p802_p8 }
 0x1c4   : > { %p805_p10 = pnand %p804_p7, %p798_p5 }
 0x1c6   : > { %808 = shalt.err (!%p805_p10)
}
 0x1c7   : > { %635 = dma.vmem_to_hbm [thread:$0]  (%p1198_p6), %s1119_s29, 64, %s1117_s30, %s440_s19  }
 0x1c8 PF: > { %p649_p11 = scmp.ge.s32.totalorder %s883_s22, 2  ;;  %s468_s26 = sand.u32 1, %s855_s15  }
 0x1c9   : > { %p1199_p1 = scmp.ne.s32.totalorder %s1188_s8, 0  ;;  %s469_s25 = scalar_lea.sflag [#allocation4], %s468_s26 }
 0x1cb   : > { %p645_p2 = pnand %p649_p11, %p1199_p1 }
 0x1cd   : > { %850 = dma.done.wait (!%p645_p2), %s469_s25, 64  }
 0x1ce   : > { %852 = vsyncadd (!%p645_p2), %s469_s25, 4294967232  ;;  %s23_s22 = sadd.s32 1, %s883_s22   ;;  %s1200_s5 = sld [smem:[#allocation11_spill]] }
 0x1cf   : > { %p20_p9 = scmp.ge.s32.totalorder %s23_s22, 6   ;;  %s1201_s6 = sld [smem:[#allocation12_spill]] }
 0x1d0   : > { %s1202_s15 = smov %s859_s16  ;;  %s1203_s16 = smov %s863_s17 }
 0x1d1   : > { %s1204_s17 = smov %s998_s10  ;;  %s1205_s18 = smov %s875_s20 }
 0x1d2   : > { %s1206_s19 = smov %s879_s21  ;;  %22 = sbr.rel (!%p20_p9) target bundleno = 11 (0xb), region = 100 }
 0x1d4   : > { %s1207_s20 = smov %s1200_s5 }
 0x1d5   : > { %s1208_s21 = smov %s1201_s6 }
 0x1d9   :  { %474 = vsyncpa [#allocation3], 1 }
 0x1da   :  { %476 = vsyncpa [#allocation3 + $0x1], 1 }
 0x1db   :  { %477 = vsyncpa [#allocation6], 1 }
 0x1dc   :  { %479 = vsyncpa [#allocation6 + $0x1], 1 }
 0x1dd   :  { %480 = vsyncpa [#allocation4], 1 }
 0x1de   :  { %482 = vsyncpa [#allocation4 + $0x1], 1 }

</bundles_post_ra>
